<compile_context>
chip_gen: v7x
topology: tpu7x:2x2x1
jax: 0.10.0
libtpu: 0.0.40
codegen_flags: <defaults>
</compile_context>

<pallas_src>
import functools

import jax
import jax.numpy as jnp
from jax.experimental import pallas as pl
from jax.experimental.pallas import tpu as pltpu

_LANE = 128       # vreg lane width
_SUBLANE = 8      # vreg sublane count (f32)
_BATCH_BLOCK = 256  # batch rows per grid step once the batch grid kicks in
_NEG_BIG = -1e30  # finite "mask" value for padded classes (avoids inf-inf NaN)


def _round_up(n, m):
    return ((n + m - 1) // m) * m


def _mlp_logsoftmax_kernel(x_ref, p_ref, o_ref, *,
                           in_features, hp, op, off_b1, off_w2, off_b2):
    # Static views into the packed parameter slab (zero-cost, 8-row aligned).
    w1 = p_ref[0:in_features, 0:hp]          # (I, Hp)
    b1 = p_ref[off_b1:off_b1 + 1, 0:hp]      # (1, Hp)
    w2 = p_ref[off_w2:off_w2 + hp, 0:op]     # (Hp, Op)
    b2 = p_ref[off_b2:off_b2 + 1, 0:op]      # (1, Op), padded classes = -1e30

    # Hidden layer: x @ W1 + b1, ReLU  (MXU matmul w/ f32 accumulate).
    h = jnp.dot(x_ref[...], w1, preferred_element_type=jnp.float32)
    h = jnp.maximum(h + b1, 0.0)             # (tb, Hp)

    # Output layer: h @ W2 + b2.  Padded W2 columns are zero, so the -1e30
    # baked into b2 already "masks" padded classes -- no iota/where needed.
    logits = jnp.dot(h, w2, preferred_element_type=jnp.float32) + b2

    # Numerically stable log-softmax over the lane-dense (128-wide) logits.
    m = jnp.max(logits, axis=-1, keepdims=True)
    shifted = logits - m
    lse = jnp.log(jnp.sum(jnp.exp(shifted), axis=-1, keepdims=True))
    o_ref[...] = (shifted - lse).astype(o_ref.dtype)   # full-lane unmasked store


def pack_params(w1, b1, w2, b2):
    """Pack (W1, b1, W2, b2) into one lane-dense f32 slab.

    Layout (rows, all offsets multiples of 8 so in-kernel slices are views):
        [0, I)                : W1  (I x Hp)
        round_up(I, 8)        : b1  (1 x Hp)
        +8                    : W2  (Hp x Op)
        +Hp                   : b2  (1 x Op)  -- padded classes set to -1e30
    """
    I, H = w1.shape
    O = w2.shape[1]
    Hp = _round_up(H, _LANE)
    Op = _round_up(O, _LANE)
    L = max(Hp, Op)

    off_b1 = _round_up(I, _SUBLANE)
    off_w2 = off_b1 + _SUBLANE
    off_b2 = off_w2 + Hp
    rows = off_b2 + _SUBLANE

    slab = jnp.zeros((rows, L), jnp.float32)
    slab = slab.at[0:I, :H].set(w1)
    slab = slab.at[off_b1, :H].set(b1.reshape(-1))
    slab = slab.at[off_w2:off_w2 + H, :O].set(w2)
    # Bake the class mask into the output bias: padded classes -> -1e30.
    b2_row = jnp.full((Op,), _NEG_BIG, jnp.float32).at[:O].set(b2.reshape(-1))
    slab = slab.at[off_b2, :Op].set(b2_row)
    return slab


@functools.partial(jax.jit, static_argnames=("output_size",))
def regression_model_forward(x, params, *, output_size):
    """x: [B, I] f32; params: slab from pack_params -> [B, output_size]."""
    B, I = x.shape
    rows, lane_width = params.shape

    # Recover static layout from the slab shape.
    off_b1 = _round_up(I, _SUBLANE)
    off_w2 = off_b1 + _SUBLANE
    off_b2 = rows - _SUBLANE
    Hp = off_b2 - off_w2
    Op = _round_up(output_size, _LANE)

    kernel = functools.partial(
        _mlp_logsoftmax_kernel,
        in_features=I, hp=Hp, op=Op,
        off_b1=off_b1, off_w2=off_w2, off_b2=off_b2)

    # Small batch: grid-less, whole problem is one VMEM-resident block.
    # Large batch: 1-D "parallel" batch grid (256-row blocks) so the x/out
    # streams are double-buffered and v7x's second TensorCore is used.
    Bp = _round_up(B, _SUBLANE)
    use_grid = Bp > _BATCH_BLOCK
    if use_grid:
        Bp = _round_up(B, _BATCH_BLOCK)
    if Bp != B:
        x = jnp.pad(x, ((0, Bp - B), (0, 0)))   # fused pad; sliced off below

    flops = 2 * Bp * (I * Hp + Hp * Op)
    bytes_accessed = 4 * (Bp * I + rows * lane_width + Bp * Op)
    cost = pl.CostEstimate(flops=flops,
                           transcendentals=Bp * (Op + 1),
                           bytes_accessed=bytes_accessed)
    out_shape = jax.ShapeDtypeStruct((Bp, Op), jnp.float32)

    if not use_grid:
        out = pl.pallas_call(
            kernel,
            out_shape=out_shape,
            in_specs=[pl.BlockSpec(memory_space=pltpu.MemorySpace.VMEM)] * 2,
            out_specs=pl.BlockSpec(memory_space=pltpu.MemorySpace.VMEM),
            cost_estimate=cost,
        )(x, params)
    else:
        tb = _BATCH_BLOCK
        out = pl.pallas_call(
            kernel,
            out_shape=out_shape,
            grid=(Bp // tb,),
            in_specs=[
                pl.BlockSpec((tb, I), lambda i: (i, 0)),
                # Constant index_map: weight slab stays VMEM-resident.
                pl.BlockSpec((rows, lane_width), lambda i: (0, 0)),
            ],
            out_specs=pl.BlockSpec((tb, Op), lambda i: (i, 0)),
            compiler_params=pltpu.CompilerParams(
                dimension_semantics=("parallel",)),
            cost_estimate=cost,
        )(x, params)

    return out[:B, :output_size]


def init_params(key, input_size, hidden_size, output_size):
    """Deterministic init mimicking nn.Linear (uniform +/- 1/sqrt(fan_in))."""
    k1, k2, k3, k4 = jax.random.split(key, 4)
    bound1 = 1.0 / (input_size ** 0.5)
    bound2 = 1.0 / (hidden_size ** 0.5)
    w1 = jax.random.uniform(k1, (input_size, hidden_size), jnp.float32,
                            -bound1, bound1)
    b1 = jax.random.uniform(k2, (1, hidden_size), jnp.float32, -bound1, bound1)
    w2 = jax.random.uniform(k3, (hidden_size, output_size), jnp.float32,
                            -bound2, bound2)
    b2 = jax.random.uniform(k4, (1, output_size), jnp.float32, -bound2, bound2)
    return w1, b1, w2, b2


if __name__ == "__main__":
    input_size = 32
    hidden_size = 64
    output_size = 16

    key = jax.random.PRNGKey(0)
    kx, kp, kx2 = jax.random.split(key, 3)
    w1, b1, w2, b2 = init_params(kp, input_size, hidden_size, output_size)

    # One-time packing into a single lane-dense parameter slab.
    params = pack_params(w1, b1, w2, b2)

    def ref_forward(xs):
        h = jnp.maximum(xs @ w1 + b1, 0.0)
        return jax.nn.log_softmax(h @ w2 + b2, axis=-1)

    # Small batch -> grid-less single-block path.
    x_small = jax.random.normal(kx, (8, input_size), jnp.float32)
    out_small = regression_model_forward(x_small, params,
                                         output_size=output_size)
    jax.block_until_ready(out_small)
    assert out_small.shape == (8, output_size)
    assert jnp.allclose(out_small, ref_forward(x_small), atol=1e-5, rtol=1e-5)

    # Larger (ragged) batch -> 1-D "parallel" batch-grid path.
    x_big = jax.random.normal(kx2, (1000, input_size), jnp.float32)
    out_big = regression_model_forward(x_big, params,
                                       output_size=output_size)
    jax.block_until_ready(out_big)
    assert out_big.shape == (1000, output_size)
    assert jnp.allclose(out_big, ref_forward(x_big), atol=1e-5, rtol=1e-5)

    print("KERNEL_OK")
</pallas_src>

<mosaic_0001>
module attributes {stable_mosaic.version = 11 : i64} {
  func.func @_mlp_logsoftmax_kernel(%arg0: memref<8x32xf32, #tpu.memory_space<vmem>>, %arg1: memref<176x128xf32, #tpu.memory_space<vmem>>, %arg2: memref<8x128xf32, #tpu.memory_space<vmem>>) attributes {dimension_semantics = [], scalar_prefetch = 0 : i64, scratch_operands = 0 : i64, tpu.core_type = #tpu.core_type<tc>} {
    %c0 = arith.constant 0 : index
    %c0_0 = arith.constant 0 : index
    %0 = vector.load %arg1[%c0, %c0_0] : memref<176x128xf32, #tpu.memory_space<vmem>>, vector<32x128xf32>
    %c32 = arith.constant 32 : index
    %c0_1 = arith.constant 0 : index
    %1 = vector.load %arg1[%c32, %c0_1] : memref<176x128xf32, #tpu.memory_space<vmem>>, vector<1x128xf32>
    %c40 = arith.constant 40 : index
    %c0_2 = arith.constant 0 : index
    %2 = vector.load %arg1[%c40, %c0_2] : memref<176x128xf32, #tpu.memory_space<vmem>>, vector<128x128xf32>
    %c168 = arith.constant 168 : index
    %c0_3 = arith.constant 0 : index
    %3 = vector.load %arg1[%c168, %c0_3] : memref<176x128xf32, #tpu.memory_space<vmem>>, vector<1x128xf32>
    %c0_4 = arith.constant 0 : index
    %c0_5 = arith.constant 0 : index
    %4 = vector.load %arg0[%c0_4, %c0_5] : memref<8x32xf32, #tpu.memory_space<vmem>>, vector<8x32xf32>
    %cst = arith.constant dense<0.000000e+00> : vector<8x128xf32>
    %5 = tpu.matmul %4, %0, %cst {dimension_numbers = #tpu.dot_dimension_numbers<[1], [0], [0], [1], [0, 0, 1, 1], [], []>} : vector<8x32xf32>, vector<32x128xf32>, vector<8x128xf32> -> vector<8x128xf32>
    %6 = vector.broadcast %1 : vector<1x128xf32> to vector<8x128xf32>
    %7 = arith.addf %5, %6 : vector<8x128xf32>
    %cst_6 = arith.constant 0.000000e+00 : f32
    %8 = vector.broadcast %cst_6 : f32 to vector<8x128xf32>
    %9 = arith.maximumf %7, %8 : vector<8x128xf32>
    %cst_7 = arith.constant dense<0.000000e+00> : vector<8x128xf32>
    %10 = tpu.matmul %9, %2, %cst_7 {dimension_numbers = #tpu.dot_dimension_numbers<[1], [0], [0], [1], [0, 0, 1, 1], [], []>} : vector<8x128xf32>, vector<128x128xf32>, vector<8x128xf32> -> vector<8x128xf32>
    %11 = vector.broadcast %3 : vector<1x128xf32> to vector<8x128xf32>
    %12 = arith.addf %10, %11 : vector<8x128xf32>
    %cst_8 = arith.constant dense<0xFF800000> : vector<8xf32>
    %13 = vector.multi_reduction <maximumf>, %12, %cst_8 [1] : vector<8x128xf32> to vector<8xf32>
    %14 = vector.shape_cast %13 : vector<8xf32> to vector<8x1xf32>
    %15 = vector.broadcast %14 : vector<8x1xf32> to vector<8x128xf32>
    %16 = arith.subf %12, %15 : vector<8x128xf32>
    %17 = math.exp %16 : vector<8x128xf32>
    %cst_9 = arith.constant dense<0.000000e+00> : vector<8xf32>
    %18 = vector.multi_reduction <add>, %17, %cst_9 [1] : vector<8x128xf32> to vector<8xf32>
    %19 = vector.shape_cast %18 : vector<8xf32> to vector<8x1xf32>
    %20 = math.log %19 : vector<8x1xf32>
    %21 = vector.broadcast %20 : vector<8x1xf32> to vector<8x128xf32>
    %22 = arith.subf %16, %21 : vector<8x128xf32>
    %c0_10 = arith.constant 0 : index
    %c0_11 = arith.constant 0 : index
    %23 = vector.load %arg2[%c0_10, %c0_11] : memref<8x128xf32, #tpu.memory_space<vmem>>, vector<8x128xf32>
    tpu.vector_store %arg2[%c0_10, %c0_11], %22 {strides = array<i32>} : memref<8x128xf32, #tpu.memory_space<vmem>>, vector<8x128xf32>,
    return
  }
}

</mosaic_0001>

<bundles_post_ra>
// kernel: regression_model_forward.1
= control target key start
LH: loop header
LB: loop body
LE: loop exit
PB: predicated region body
PF: predicated region fallthrough
CT: control target
= control target key end

     0   :  { %7 = vsyncpa [#allocation3], 0  ;;  %s492_s0 = inlined_call_operand.hbm [shape: f32[8,32], index: 0, kind: input, shape index: {}]   ;;  %s493_s1 = inlined_call_operand.hbm [shape: f32[176,128], index: 1, kind: input, shape index: {}]   ;;  %s494_s2 = inlined_call_operand.hbm [shape: f32[8,128], index: 2, kind: output, shape index: {}]  }
   0x1   :  { %8 = vsyncpa [#allocation6], 0 }
   0x2   :  { %9 = vsyncpa [#allocation4], 0  ;;  %s426_s9 = smov [#allocation2]   ;;  %s427_s11 = smov [#allocation5]  }
   0x3   :  { %s16_s10 = sshll.u32 %s426_s9, 4  ;;  %s25_s12 = sshll.u32 %s427_s11, 4  ;;  %s17_s10 = int_to_ptr.vmem [resolvable:$true] %s16_s10  ;;  %s449_s12 = int_to_ptr.vmem [resolvable:$true] %s25_s12 }
   0x4   :  { %s354_s15 = scalar_lea.hbm %s492_s0, 128 }
   0x5   :  { %p355_p0 = scmp.ne.s32.totalorder %s492_s0, %s354_s15  ;;  %p358_p1 = scmp.lt.u32.totalorder %s354_s15, %s492_s0 }
   0x7   :  { %p360_p2 = pnand %p358_p1, %p355_p0 }
   0x9   :  { %363 = shalt.err (!%p360_p2)
}
   0xa   :  { %s364_s20 = scalar_lea.vmem %s17_s10, 128  ;;  %p369_p4 = scmp.lt.s32.totalorder %s17_s10, %s17_s10 }
   0xb   :  { %p365_p3 = scmp.ne.s32.totalorder %s17_s10, %s364_s20  ;;  %p370_p5 = scmp.lt.s32.totalorder %s364_s20, %s364_s20 }
   0xd   :  { %p371_p6 = por %p370_p5, %p369_p4 }
   0xf   :  { %p372_p7 = pnand %p371_p6, %p365_p3 }
  0x11   :  { %375 = shalt.err (!%p372_p7)
}
  0x12   :  { %19 = dma.hbm_to_vmem [thread:$0]  %s492_s0, 128, %s17_s10, [#allocation3]  }
  0x13   :  { %s376_s25 = scalar_lea.hbm %s493_s1, 2816 }
  0x14   :  { %p377_p8 = scmp.ne.s32.totalorder %s493_s1, %s376_s25  ;;  %p380_p9 = scmp.lt.u32.totalorder %s376_s25, %s493_s1 }
  0x16   :  { %p382_p10 = pnand %p380_p9, %p377_p8 }
  0x18   :  { %385 = shalt.err (!%p382_p10)
}
  0x19   :  { %s386_s30 = scalar_lea.vmem %s449_s12, 2816  ;;  %p391_p12 = scmp.lt.s32.totalorder %s449_s12, %s449_s12 }
  0x1a   :  { %p387_p11 = scmp.ne.s32.totalorder %s449_s12, %s386_s30  ;;  %p392_p13 = scmp.lt.s32.totalorder %s386_s30, %s386_s30 }
  0x1c   :  { %p393_p0 = por %p392_p13, %p391_p12 }
  0x1e   :  { %p394_p1 = pnand %p393_p0, %p387_p11 }
  0x20   :  { %397 = shalt.err (!%p394_p1)
}
  0x21   :  { %s428_s0 = smov 128   ;;  %s429_s3 = smov 8  }
  0x22   :  { %31 = dma.hbm_to_vmem [thread:$0]  %s493_s1, 2816, %s449_s12, [#allocation6], %s428_s0, %s428_s0, %s429_s3  }
  0x23   :  { %420 = dma.done.wait [#allocation3], 128  }
  0x24   :  { %421 = vsyncadd [#allocation3], 4294967168 }
  0x25   :  { %422 = dma.done.wait [#allocation6], 2816  }
  0x26   :  { %423 = vsyncadd [#allocation6], 4294964480  ;;  %v430_v0 = vmov 0.0|0.0   ;;  %vm431_vm0 = vmmov 0   ;;  %v432_v1 = vmov 0.0   ;;  %v38_v2 = vld [vmem:[#allocation5] sm:$0xff] }
  0x27   :  { %312 = vmatprep.subr.bf16.mxu0 %v430_v0  ;;  %274 = vmatprep.mubr.msk.f32.mxu0 %vm431_vm0, %v432_v1  ;;  %v39_v3 = vld [vmem:[#allocation5 + $0x8] sm:$0xff]  ;;  %v40_v4 = vld [vmem:[#allocation5 + $0x10] sm:$0xff]  ;;  %v41_v6 = vld [vmem:[#allocation5 + $0x18] sm:$0xff]  ;;  %vm65_vm1 = vcmask 261120   ;;  %s433_s1 = smov [#allocation7]  }
  0x28   :  { %318 = vmatprep.subr.bf16.mxu1 %v430_v0  ;;  %309 = vmatprep.mubr.msk.f32.mxu1 %vm431_vm0, %v432_v1  ;;  %v313_v5 = vpack.c.bf16 %v39_v3, %v38_v2  ;;  %v43_v7 = vld [vmem:[#allocation5 + $0x28] sm:$0xff]  ;;  %v44_v8 = vld [vmem:[#allocation5 + $0x30] sm:$0xff]  ;;  %v45_v9 = vld [vmem:[#allocation5 + $0x38] sm:$0xff]  ;;  %v316_v11 = vpack.c.bf16 %v41_v6, %v40_v4  ;;  %s231_s6 = sshll.u32 %s433_s1, 4  ;;  %s232_s6 = int_to_ptr.vmem [resolvable:$true] %s231_s6 }
  0x29   :  { %v46_v10 = vld [vmem:[#allocation5 + $0x40] sm:$0xff]  ;;  %v319_v12 = vpack.c.bf16 %v44_v8, %v43_v7  ;;  %v47_v14 = vld [vmem:[#allocation5 + $0x48] sm:$0xff]  ;;  %v48_v15 = vld [vmem:[#allocation5 + $0x50] sm:$0xff]  ;;  %s398_s7 = scalar_lea.vmem %s232_s6, 128  ;;  %p403_p3 = scmp.lt.s32.totalorder %s232_s6, %s232_s6 }
  0x2a   :  { %314 = vmatpush3.bf16.msra.mxu0 %v313_v5  ;;  %v322_v13 = vpack.c.bf16 %v46_v10, %v45_v9  ;;  %v60_v16 = vld [vmem:[#allocation2] sm:$0xff]  ;;  %v325_v17 = vpack.c.bf16 %v48_v15, %v47_v14  ;;  %v50_v19 = vld [vmem:[#allocation5 + $0x60] sm:$0xff]  ;;  %v51_v21 = vld [vmem:[#allocation5 + $0x68] sm:$0xff]  ;;  %p399_p2 = scmp.ne.s32.totalorder %s232_s6, %s398_s7  ;;  %p404_p4 = scmp.lt.s32.totalorder %s398_s7, %s398_s7 }
  0x2b   :  { %315 = vmatprep.subr.bf16.mxu0 %v430_v0  ;;  %320 = vmatpush3.bf16.msra.mxu1 %v319_v12  ;;  %v49_v18 = vld [vmem:[#allocation5 + $0x58] sm:$0xff]  ;;  %v52_v22 = vld [vmem:[#allocation5 + $0x70] sm:$0xff]  ;;  %v54_v25 = vld [vmem:[#allocation5 + $0x80] sm:$0xff] }
  0x2c   :  { %321 = vmatprep.subr.bf16.mxu1 %v430_v0  ;;  %v328_v20 = vpack.c.bf16 %v50_v19, %v49_v18  ;;  %v331_v23 = vpack.c.bf16 %v52_v22, %v51_v21  ;;  %v53_v24 = vld [vmem:[#allocation5 + $0x78] sm:$0xff]  ;;  %v55_v27 = vld [vmem:[#allocation5 + $0x88] sm:$0xff]  ;;  %v56_v28 = vld [vmem:[#allocation5 + $0x90] sm:$0xff]  ;;  %p405_p5 = por %p404_p4, %p403_p3 }
  0x2d   :  { %v334_v26 = vpack.c.bf16 %v54_v25, %v53_v24  ;;  %v337_v29 = vpack.c.bf16 %v56_v28, %v55_v27  ;;  %v57_v30 = vld [vmem:[#allocation5 + $0x98] sm:$0xff]  ;;  %v58_v31 = vld [vmem:[#allocation5 + $0xa0] sm:$0xff]  ;;  %v243_v38 = vld [vmem:[#allocation5 + $0xa8] ss:$0 sm:$0xff] }
  0x2e   :  { %317 = vmatpush3.bf16.msra.mxu0 %v316_v11  ;;  %v340_v32 = vpack.c.bf16 %v58_v31, %v57_v30  ;;  %v241_v33 = vld [vmem:[#allocation5 + $0x20] ss:$0 sm:$0xff]  ;;  %p406_p6 = pnand %p405_p5, %p399_p2 }
  0x2f   :  { %323 = vmatpush3.bf16.msra.mxu1 %v322_v13 }
  0x30   :  { %324 = vmatprep.subr.bf16.mxu1 %v430_v0 }
  0x31   :  { %275 = vmatmul.mubr.msk.f32.vlgmr.msra.gmra.mrb[0].mxu0 %vm65_vm1, %v60_v16 }
  0x33   :  { %326 = vmatpush3.bf16.msra.mxu1 %v325_v17 }
  0x34   :  { %327 = vmatprep.subr.bf16.mxu1 %v430_v0 }
  0x37   :  { %329 = vmatpush3.bf16.msra.mxu1 %v328_v20 }
  0x38   :  { %330 = vmatprep.subr.bf16.mxu1 %v430_v0 }
  0x3b   :  { %332 = vmatpush3.bf16.msra.mxu1 %v331_v23 }
  0x3c   :  { %333 = vmatprep.subr.bf16.mxu1 %v430_v0 }
  0x3f   :  { %335 = vmatpush3.bf16.msra.mxu1 %v334_v26 }
  0x40   :  { %336 = vmatprep.subr.bf16.mxu1 %v430_v0 }
  0x43   :  { %338 = vmatpush3.bf16.msra.mxu1 %v337_v29 }
  0x44   :  { %339 = vmatprep.subr.bf16.mxu1 %v430_v0 }
  0x47   :  { %341 = vmatpush3.bf16.msra.mxu1 %v340_v32 }
 0x104   :  { %v135_v34 = vpop.f32.mrb[0].mxu0 }
 0x105   :  { %v136_v35 = vadd.f32 %v241_v33, %v135_v34  ;;  %v276_v36 = vpop.f32.mrb[1].mxu0 }
 0x107   :  { %v139_v37 = vmax.f32 %v136_v35, 0.0 }
 0x109   :  { %310 = vmatmul.mubr.f32.vlgmr.msra.gmra.mrb[0].mxu1 %v139_v37 }
 0x1dc   :  { %v210_v39 = vpop.f32.mrb[0].mxu1 }
 0x1dd   :  { %v211_v40 = vadd.f32 %v243_v38, %v210_v39  ;;  %v311_v41 = vpop.f32.mrb[1].mxu1 }
 0x1df   :  { %214 = vmax.xlane.f32.xlu0 %v211_v40 }
 0x26c   :  { %v215_v42 = vpop.xlane.xlu0 %214 }
 0x26d   :  { %v216_v43 = vsub.f32 %v211_v40, %v215_v42 }
 0x26f   :  { %v217_v44 = vmul.f32 1.442695, %v216_v43 }
 0x271   :  { %350 = vpow2.f32 %v217_v44 }
 0x27b   :  { %v351_v45 = vpop.eup %350 }
 0x27c   :  { %219 = vadd.xlane.f32.xlu0 %v351_v45 }
 0x309   :  { %v220_v46 = vpop.xlane.xlu0 %219 }
 0x30a   :  { %352 = vlog2.f32 %v220_v46 }
 0x314   :  { %v353_v47 = vpop.eup %352 }
 0x315   :  { %v222_v48 = vmul.f32 0.6931472, %v353_v47 }
 0x317   :  { %v223_v49 = vsub.f32 %v216_v43, %v222_v48 }
 0x319   :  { %224 = vst [vmem:[#allocation7] sm:$0xff] %v223_v49 }
 0x31a   :  { %409 = shalt.err (!%p406_p6)
}
 0x31b   :  { %s410_s10 = scalar_lea.hbm %s494_s2, 128 }
 0x31c   :  { %p411_p7 = scmp.ne.s32.totalorder %s494_s2, %s410_s10  ;;  %p414_p8 = scmp.lt.u32.totalorder %s410_s10, %s494_s2 }
 0x31e   :  { %p416_p9 = pnand %p414_p8, %p411_p7 }
 0x320   :  { %419 = shalt.err (!%p416_p9)
}
 0x321   :  { %234 = dma.vmem_to_hbm [thread:$0]  %s232_s6, 128, %s494_s2, [#allocation4]  }
 0x322   :  { %424 = dma.done.wait [#allocation4], 128  }
 0x323   :  { %425 = vsyncadd [#allocation4], 4294967168 }
 0x324   :  { %238 = vsyncpa [#allocation3], 1 }
 0x325   :  { %239 = vsyncpa [#allocation6], 1 }
 0x326   :  { %240 = vsyncpa [#allocation4], 1 }

</bundles_post_ra>
